<compile_context>
chip_gen: v5e
topology: v5e:2x2
jax: 0.10.0
libtpu: 0.0.40
codegen_flags: <defaults>
</compile_context>

<pallas_src>
import functools

import jax
import jax.numpy as jnp
from jax.experimental import pallas as pl
from jax.experimental.pallas import tpu as pltpu


def _bgu_kernel(u_ref, v_ref, w_ref, b1_ref, gamma_ref, beta_ref, o_ref, *, eps):
    # u_ref/v_ref: (BM, N, C2)   w_ref: (N, N)   b1_ref: (N, 1) (bias + 1)
    # gamma_ref/beta_ref: (1, C2)                o_ref: (BM, N, C2)
    u = u_ref[...]
    v = v_ref[...].astype(jnp.float32)          # f32 stats for LayerNorm

    mean = jnp.mean(v, axis=-1, keepdims=True)
    centered = v - mean
    var = jnp.mean(centered * centered, axis=-1, keepdims=True)
    v_ln = centered * jax.lax.rsqrt(var + eps)
    v_ln = v_ln * gamma_ref[...] + beta_ref[...]          # (1, C2) broadcasts

    bm, n, _ = v_ln.shape
    # Spatial mixing over N for all BM slabs in one batched MXU call:
    # v2[b, n, c] = sum_m W[n, m] * v_ln[b, m, c]
    w_b = jnp.broadcast_to(w_ref[...].astype(jnp.float32), (bm, n, n))
    v2 = jnp.einsum("bnm,bmc->bnc", w_b, v_ln,
                    preferred_element_type=jnp.float32)
    v2 = v2 + b1_ref[...]                                  # bias (+1 folded), per-n

    o_ref[...] = (u.astype(jnp.float32) * v2).astype(o_ref.dtype)


def _pick_bm(bg, n, c2, itemsize, vmem_budget_bytes=20 << 20):
    """Largest divisor of bg that fits the VMEM budget and keeps grid >= 2."""
    # Double-buffered u + v input blocks and output block, plus f32 temps.
    per_row = 2 * (2 * n * c2 * itemsize + n * c2 * itemsize) + 4 * n * c2 * 4
    cap = max(1, vmem_budget_bytes // max(per_row, 1))
    if bg >= 2:
        cap = min(cap, bg // 2)          # keep >= 2 grid steps (megacore / 2 TCs)
    bm = 1
    for d in range(1, bg + 1):
        if bg % d == 0 and d <= cap:
            bm = d
    return bm


def block_gating_unit(x, w, bias, gamma, beta, *, eps=1e-5):
    """x: (B, G, N, C). w: (N, N). bias: (N,). gamma/beta: (C//2,)."""
    B, G, N, C = x.shape
    assert C % 2 == 0, "channel dim must be even (C2 = C // 2)"
    C2 = C // 2
    BG = B * G

    xr = x.reshape(BG, N, C)
    b1 = (bias.astype(jnp.float32) + 1.0).reshape(N, 1)    # fold the "+ 1.0"
    gamma2 = gamma.astype(jnp.float32).reshape(1, C2)
    beta2 = beta.astype(jnp.float32).reshape(1, C2)

    BM = _pick_bm(BG, N, C2, x.dtype.itemsize)
    grid = (BG // BM,)

    common_specs = [
        pl.BlockSpec((N, N), lambda i: (0, 0)),      # Dense_0 weight
        pl.BlockSpec((N, 1), lambda i: (0, 0)),      # Dense_0 bias + 1
        pl.BlockSpec((1, C2), lambda i: (0, 0)),     # LayerNorm gamma
        pl.BlockSpec((1, C2), lambda i: (0, 0)),     # LayerNorm beta
    ]

    if C2 % 128 == 0:
        # Lane-aligned halves: select u-half (lane-block 0) and v-half
        # (lane-block 1) of the same HBM array directly via the BlockSpec DMA.
        in_specs = [
            pl.BlockSpec((BM, N, C2), lambda i: (i, 0, 0)),   # u half
            pl.BlockSpec((BM, N, C2), lambda i: (i, 0, 1)),   # v half
        ] + common_specs
        args = (xr, xr, w, b1, gamma2, beta2)
    else:
        # Fallback for unaligned C2: split once in the wrapper so each kernel
        # tile is full-width (no in-kernel lane split / relayout).
        u_half = xr[:, :, :C2]
        v_half = xr[:, :, C2:]
        in_specs = [
            pl.BlockSpec((BM, N, C2), lambda i: (i, 0, 0)),
            pl.BlockSpec((BM, N, C2), lambda i: (i, 0, 0)),
        ] + common_specs
        args = (u_half, v_half, w, b1, gamma2, beta2)

    out = pl.pallas_call(
        functools.partial(_bgu_kernel, eps=eps),
        out_shape=jax.ShapeDtypeStruct((BG, N, C2), x.dtype),
        grid=grid,
        in_specs=in_specs,
        out_specs=pl.BlockSpec((BM, N, C2), lambda i: (i, 0, 0)),
        compiler_params=pltpu.CompilerParams(
            dimension_semantics=("parallel",),
            vmem_limit_bytes=32 << 20,
        ),
    )(*args)

    return out.reshape(B, G, N, C2)


def _reference(x, w, bias, gamma, beta, eps=1e-5):
    C = x.shape[-1]
    c2 = C // 2
    u, v = x[..., :c2], x[..., c2:]
    mean = jnp.mean(v, axis=-1, keepdims=True)
    var = jnp.mean((v - mean) ** 2, axis=-1, keepdims=True)
    v_ln = (v - mean) * jax.lax.rsqrt(var + eps) * gamma + beta
    vp = jnp.swapaxes(v_ln, -1, -2)                 # (B, G, C2, N)
    vp = jnp.einsum("bgcm,nm->bgcn", vp, w) + bias  # Linear: x @ W^T + b
    v2 = jnp.swapaxes(vp, -1, -2)                   # (B, G, N, C2)
    return u * (v2 + 1.0)


if __name__ == "__main__":
    # C = 256 -> C2 = 128: lane-aligned halves and lane-dense output stores.
    # B*G = 8, BM = 4 -> grid of 2 steps (keeps both TensorCores busy on v7x).
    B, G, N, C = 2, 4, 16, 256
    key = jax.random.PRNGKey(0)
    kx, kw, kb, kg, kbt = jax.random.split(key, 5)

    x = jax.random.normal(kx, (B, G, N, C), dtype=jnp.float32)
    w = jax.random.normal(kw, (N, N), dtype=jnp.float32) * (1.0 / jnp.sqrt(N))
    bias = jax.random.normal(kb, (N,), dtype=jnp.float32) * 0.1
    gamma = 1.0 + 0.1 * jax.random.normal(kg, (C // 2,), dtype=jnp.float32)
    beta = 0.1 * jax.random.normal(kbt, (C // 2,), dtype=jnp.float32)

    out = jax.block_until_ready(block_gating_unit(x, w, bias, gamma, beta))
    ref = _reference(x, w, bias, gamma, beta)

    assert out.shape == (B, G, N, C // 2)
    assert jnp.allclose(out, ref, atol=1e-4, rtol=1e-4), "mismatch vs reference"

    print("KERNEL_OK")
</pallas_src>

<mosaic_0001>
module attributes {stable_mosaic.version = 11 : i64} {
  func.func @_bgu_kernel(%arg0: i32, %arg1: memref<4x16x128xf32, #tpu.memory_space<vmem>>, %arg2: memref<4x16x128xf32, #tpu.memory_space<vmem>>, %arg3: memref<16x16xf32, #tpu.memory_space<vmem>>, %arg4: memref<16x1xf32, #tpu.memory_space<vmem>>, %arg5: memref<1x128xf32, #tpu.memory_space<vmem>>, %arg6: memref<1x128xf32, #tpu.memory_space<vmem>>, %arg7: memref<4x16x128xf32, #tpu.memory_space<vmem>>) attributes {dimension_semantics = [#tpu.dimension_semantics<parallel>], iteration_bounds = array<i64: 2>, scalar_prefetch = 0 : i64, scratch_operands = 0 : i64, tpu.core_type = #tpu.core_type<tc>, window_params = [{transform_indices = @transform_0, window_bounds = array<i64: 4, 16, 128>}, {transform_indices = @transform_1, window_bounds = array<i64: 4, 16, 128>}, {pipeline_mode = #tpu.pipeline_mode<synchronous>, transform_indices = @transform_2, window_bounds = array<i64: 16, 16>}, {pipeline_mode = #tpu.pipeline_mode<synchronous>, transform_indices = @transform_3, window_bounds = array<i64: 16, 1>}, {pipeline_mode = #tpu.pipeline_mode<synchronous>, transform_indices = @transform_4, window_bounds = array<i64: 1, 128>}, {pipeline_mode = #tpu.pipeline_mode<synchronous>, transform_indices = @transform_5, window_bounds = array<i64: 1, 128>}, {transform_indices = @transform_6, window_bounds = array<i64: 4, 16, 128>}]} {
    %c0 = arith.constant 0 : index
    %c0_0 = arith.constant 0 : index
    %c0_1 = arith.constant 0 : index
    %0 = vector.load %arg1[%c0, %c0_0, %c0_1] : memref<4x16x128xf32, #tpu.memory_space<vmem>>, vector<4x16x128xf32>
    %c0_2 = arith.constant 0 : index
    %c0_3 = arith.constant 0 : index
    %c0_4 = arith.constant 0 : index
    %1 = vector.load %arg2[%c0_2, %c0_3, %c0_4] : memref<4x16x128xf32, #tpu.memory_space<vmem>>, vector<4x16x128xf32>
    %cst = arith.constant dense<0.000000e+00> : vector<4x16xf32>
    %2 = vector.multi_reduction <add>, %1, %cst [2] : vector<4x16x128xf32> to vector<4x16xf32>
    %3 = vector.shape_cast %2 : vector<4x16xf32> to vector<4x16x1xf32>
    %cst_5 = arith.constant 1.280000e+02 : f32
    %4 = vector.broadcast %cst_5 : f32 to vector<4x16x1xf32>
    %5 = arith.divf %3, %4 : vector<4x16x1xf32>
    %6 = vector.broadcast %5 : vector<4x16x1xf32> to vector<4x16x128xf32>
    %7 = arith.subf %1, %6 : vector<4x16x128xf32>
    %8 = arith.mulf %7, %7 : vector<4x16x128xf32>
    %cst_6 = arith.constant dense<0.000000e+00> : vector<4x16xf32>
    %9 = vector.multi_reduction <add>, %8, %cst_6 [2] : vector<4x16x128xf32> to vector<4x16xf32>
    %10 = vector.shape_cast %9 : vector<4x16xf32> to vector<4x16x1xf32>
    %cst_7 = arith.constant 1.280000e+02 : f32
    %11 = vector.broadcast %cst_7 : f32 to vector<4x16x1xf32>
    %12 = arith.divf %10, %11 : vector<4x16x1xf32>
    %cst_8 = arith.constant 9.99999974E-6 : f32
    %13 = vector.broadcast %cst_8 : f32 to vector<4x16x1xf32>
    %14 = arith.addf %12, %13 : vector<4x16x1xf32>
    %15 = math.rsqrt %14 : vector<4x16x1xf32>
    %16 = vector.broadcast %15 : vector<4x16x1xf32> to vector<4x16x128xf32>
    %17 = arith.mulf %7, %16 : vector<4x16x128xf32>
    %c0_9 = arith.constant 0 : index
    %c0_10 = arith.constant 0 : index
    %18 = vector.load %arg5[%c0_9, %c0_10] : memref<1x128xf32, #tpu.memory_space<vmem>>, vector<1x128xf32>
    %19 = vector.shape_cast %18 : vector<1x128xf32> to vector<1x1x128xf32>
    %20 = vector.broadcast %19 : vector<1x1x128xf32> to vector<4x16x128xf32>
    %21 = arith.mulf %17, %20 : vector<4x16x128xf32>
    %c0_11 = arith.constant 0 : index
    %c0_12 = arith.constant 0 : index
    %22 = vector.load %arg6[%c0_11, %c0_12] : memref<1x128xf32, #tpu.memory_space<vmem>>, vector<1x128xf32>
    %23 = vector.shape_cast %22 : vector<1x128xf32> to vector<1x1x128xf32>
    %24 = vector.broadcast %23 : vector<1x1x128xf32> to vector<4x16x128xf32>
    %25 = arith.addf %21, %24 : vector<4x16x128xf32>
    %c0_13 = arith.constant 0 : index
    %c0_14 = arith.constant 0 : index
    %26 = vector.load %arg3[%c0_13, %c0_14] : memref<16x16xf32, #tpu.memory_space<vmem>>, vector<16x16xf32>
    %27 = vector.shape_cast %26 : vector<16x16xf32> to vector<1x16x16xf32>
    %28 = vector.broadcast %27 : vector<1x16x16xf32> to vector<4x16x16xf32>
    "tpu.trace_start"() <{level = 10 : i32, message = "bnm,bmc->bnc"}> : () -> ()
    %cst_15 = arith.constant dense<0.000000e+00> : vector<4x16x128xf32>
    %29 = tpu.matmul %28, %25, %cst_15 {dimension_numbers = #tpu.dot_dimension_numbers<[2], [1], [1], [2], [0, 0, 0, 1, 1, 2], [0], [0]>} : vector<4x16x16xf32>, vector<4x16x128xf32>, vector<4x16x128xf32> -> vector<4x16x128xf32>
    "tpu.trace_stop"() : () -> ()
    %c0_16 = arith.constant 0 : index
    %c0_17 = arith.constant 0 : index
    %30 = vector.load %arg4[%c0_16, %c0_17] : memref<16x1xf32, #tpu.memory_space<vmem>>, vector<16x1xf32>
    %31 = vector.shape_cast %30 : vector<16x1xf32> to vector<1x16x1xf32>
    %32 = vector.broadcast %31 : vector<1x16x1xf32> to vector<4x16x128xf32>
    %33 = arith.addf %29, %32 : vector<4x16x128xf32>
    %34 = arith.mulf %0, %33 : vector<4x16x128xf32>
    %c0_18 = arith.constant 0 : index
    %c0_19 = arith.constant 0 : index
    %c0_20 = arith.constant 0 : index
    %35 = vector.load %arg7[%c0_18, %c0_19, %c0_20] : memref<4x16x128xf32, #tpu.memory_space<vmem>>, vector<4x16x128xf32>
    tpu.vector_store %arg7[%c0_18, %c0_19, %c0_20], %34 {strides = array<i32>} : memref<4x16x128xf32, #tpu.memory_space<vmem>>, vector<4x16x128xf32>,
    return
  }
  func.func @transform_0(%arg0: i32) -> (i32, i32, i32) {
    %c0_i32 = arith.constant 0 : i32
    %c0_i32_0 = arith.constant 0 : i32
    %c0_i32_1 = arith.constant 0 : i32
    return %arg0, %c0_i32, %c0_i32_0 : i32, i32, i32
  }
  func.func @transform_1(%arg0: i32) -> (i32, i32, i32) {
    %c0_i32 = arith.constant 0 : i32
    %c1_i32 = arith.constant 1 : i32
    %c0_i32_0 = arith.constant 0 : i32
    return %arg0, %c0_i32, %c1_i32 : i32, i32, i32
  }
  func.func @transform_2(%arg0: i32) -> (i32, i32) {
    %c0_i32 = arith.constant 0 : i32
    %c0_i32_0 = arith.constant 0 : i32
    %c0_i32_1 = arith.constant 0 : i32
    return %c0_i32, %c0_i32_0 : i32, i32
  }
  func.func @transform_3(%arg0: i32) -> (i32, i32) {
    %c0_i32 = arith.constant 0 : i32
    %c0_i32_0 = arith.constant 0 : i32
    %c0_i32_1 = arith.constant 0 : i32
    return %c0_i32, %c0_i32_0 : i32, i32
  }
  func.func @transform_4(%arg0: i32) -> (i32, i32) {
    %c0_i32 = arith.constant 0 : i32
    %c0_i32_0 = arith.constant 0 : i32
    %c0_i32_1 = arith.constant 0 : i32
    return %c0_i32, %c0_i32_0 : i32, i32
  }
  func.func @transform_5(%arg0: i32) -> (i32, i32) {
    %c0_i32 = arith.constant 0 : i32
    %c0_i32_0 = arith.constant 0 : i32
    %c0_i32_1 = arith.constant 0 : i32
    return %c0_i32, %c0_i32_0 : i32, i32
  }
  func.func @transform_6(%arg0: i32) -> (i32, i32, i32) {
    %c0_i32 = arith.constant 0 : i32
    %c0_i32_0 = arith.constant 0 : i32
    %c0_i32_1 = arith.constant 0 : i32
    return %arg0, %c0_i32, %c0_i32_0 : i32, i32, i32
  }
}

</mosaic_0001>

<bundles_post_ra>
// kernel: tpu_custom_call.1
= control target key start
LH: loop header
LB: loop body
LE: loop exit
PB: predicated region body
PF: predicated region fallthrough
CT: control target
= control target key end

     0   :  { %s1446_s0 = inlined_call_operand.hbm [shape: f32[8,16,256], index: 0, kind: input, shape index: {}]   ;;  %s1447_s1 = inlined_call_operand.hbm [shape: f32[8,16,256], index: 1, kind: input, shape index: {}]   ;;  %s1448_s2 = inlined_call_operand.vmem [shape: f32[16,16], index: 2, kind: input, shape index: {}]   ;;  %s1449_s3 = inlined_call_operand.vmem [shape: f32[16,1], index: 3, kind: input, shape index: {}]   ;;  %s1450_s4 = inlined_call_operand.vmem [shape: f32[1,128], index: 4, kind: input, shape index: {}]   ;;  %s1451_s5 = inlined_call_operand.vmem [shape: f32[1,128], index: 5, kind: input, shape index: {}]   ;;  %s1452_s6 = inlined_call_operand.hbm [shape: f32[8,16,128], index: 6, kind: output, shape index: {}]  }
   0x1   :  { %1459 = sst [smem:[#allocation15_spill]] %s1446_s0 }
   0x2   :  { %11 = vsyncpa [#allocation3], 0 }
   0x3   :  { %13 = vsyncpa [#allocation3 + $0x1], 0 }
   0x4   :  { %14 = vsyncpa [#allocation6], 0 }
   0x5   :  { %16 = vsyncpa [#allocation6 + $0x1], 0 }
   0x6   :  { %17 = vsyncpa [#allocation4], 0 }
   0x7   :  { %19 = vsyncpa [#allocation4 + $0x1], 0  ;;  %s1059_s21 = smov 0   ;;  %s1061_s22 = smov 0  }
   0x8   :  { %s1063_s23 = smov 0   ;;  %s1065_s24 = smov 0  }
   0x9 LB: > { %1460 = sst [smem:[#allocation11_spill]] %s1011_s23  ;;  %s1080_s25 = sadd.s32 4294967295, %s1015_s24   ;;  %s1015_s24 = sphi %s1065_s24, %s1480_s24   ;;  %s1011_s23 = sphi %s1063_s23, %s1482_s23   ;;  %s1007_s22 = sphi %s1061_s22, %s1484_s22   ;;  %s1003_s21 = sphi %s1059_s21, %s1483_s21  }
   0xa   : > { %s771_s26 = sadd.s32 4294967294, %s1015_s24   ;;  %s1084_s27 = sadd.s32 1, %s1015_s24  }
   0xb   : > { %1461 = sst [smem:[#allocation12_spill]] %s1084_s27  ;;  %s32_s28 = sadd.s32 1, %s1011_s23 }
   0xc   : > { %s29_s29 = ssub.s32 %s1015_s24, %s1084_s27  ;;  %p39_p0 = scmp.ne.s32.totalorder %s1011_s23, %s1007_s22 }
   0xd   : > { %p30_p1 = scmp.eq.s32.totalorder %s29_s29, 0  ;;  %p40_p2 = scmp.eq.s32.totalorder %s1015_s24, 0 }
   0xe   : > { %p45_p3 = scmp.ne.s32.totalorder %s1007_s22, %s1003_s21  ;;  %p46_p4 = scmp.eq.s32.totalorder %s1080_s25, 0 }
   0xf   : > { %s1096_s30 = scalar_select %p30_p1, %s1011_s23, %s32_s28  }
  0x10   : > { %p1098_p5 = por %p40_p2, %p39_p0  ;;  %p1102_p6 = por %p46_p4, %p45_p3 }
  0x11   : > { %1462 = sst [smem:[#allocation13_spill]] %s1096_s30  ;;  %p179_p7 = scmp.eq.s32.totalorder %s1080_s25, 1 }
  0x12   : > { %p185_p8 = scmp.eq.s32.totalorder %s771_s26, 1  ;;  %p773_p9 = scmp.ge.s32.totalorder %s1015_s24, 2 }
  0x13   : > { %p821_p10 = scmp.lt.s32.totalorder %s1015_s24, 2  ;;  %p1109_p11 = por %p179_p7, %p39_p0 }
  0x14   : > { %p1113_p12 = por %p185_p8, %p45_p3  ;;  %s1118_s11 = sand.u32 1, %s1011_s23  }
  0x15   : > { %s1454_s12 = sshll.u32 %s1015_s24, 7  ;;  %s1453_s13 = sshll.u32 %s1118_s11, 6 }
  0x16   : > { %s1466_s10 = scalar_select %p1113_p12, 1, 0 }
  0x17   : > { %s1468_s0 = sld [smem:[#allocation15_spill]]  ;;  %s221_s18 = scalar_lea.vmem [#allocation2], %s1453_s13 }
  0x18   : > { %1467 = sst [smem:[#allocation14_spill]] %s1466_s10  ;;  %s230_s19 = sshll.u32 %s221_s18, 4  ;;  %s231_s19 = int_to_ptr.vmem [resolvable:$true] %s230_s19 }
  0x19   : > { %p1131_p13 = pnand %p821_p10, %p1098_p5  ;;  %p781_p0 = scmp.ge.s32.totalorder %s1015_s24, 1 }
  0x1a   : > { %s218_s26 = scalar_lea.sflag [#allocation3], %s1118_s11 }
  0x1b   : > { %p889_p2 = pneg %p1131_p13 }
  0x1d   : > { %s227_s16 = scalar_lea.hbm %s1468_s0, %s1454_s12  ;;  %s892_s15 = scalar_lea.hbm %s1468_s0, 256 }
  0x1e   : > { %s228_s17 = sshll.u32 %s227_s16, 4  ;;  %s229_s17 = int_to_ptr.hbm [resolvable:$true] %s228_s17 }
  0x1f   : > { %s885_s28 = sshra.s32 %s229_s17, 4  ;;  %s886_s28 = int_to_ptr.hbm [resolvable:$true] %s885_s28 }
  0x20   : > { %s887_s29 = scalar_lea.hbm %s886_s28, 64  ;;  %p893_p5 = scmp.lt.s32.totalorder %s886_s28, %s1468_s0 }
  0x21   : > { %p888_p1 = scmp.ne.s32.totalorder %s886_s28, %s887_s29  ;;  %p894_p7 = scmp.lt.s32.totalorder %s892_s15, %s887_s29 }
  0x23   : > { %p890_p3 = pnand %p889_p2, %p888_p1  ;;  %p895_p8 = por %p894_p7, %p893_p5 }
  0x25   : > { %p891_p4 = pneg %p890_p3 }
  0x27   : > { %p896_p10 = pnand %p895_p8, %p891_p4 }
  0x29   : > { %899 = shalt.err (!%p896_p10)
}
  0x2a   : > { %s1017_s13 = smov 256   ;;  %s1018_s12 = smov 128  }
  0x2b   : > { %s1019_s30 = smov 8   ;;  %p262_p1 = scmp.lt.s32.totalorder %s1015_s24, 3 }
  0x2c   : > { %813 = dma.hbm_to_vmem [thread:$0]  (!%p1131_p13), %s229_s17, 1024, %s231_s19, %s218_s26, %s1017_s13, %s1018_s12, %s1019_s30  }
  0x2d   : > { %s1470_s28 = sshll.u32 %s1015_s24, 7  ;;  %p1160_p3 = pnand %p781_p0, %p262_p1 }
  0x2e   : > { %s713_s7 = scalar_lea.hbm %s1447_s1, %s1470_s28  ;;  %s1472_s0 = sshll.u32 %s1118_s11, 6 }
  0x2f   : > { %s714_s16 = scalar_lea.hbm %s713_s7, 8  ;;  %s244_s23 = scalar_lea.vmem [#allocation5], %s1472_s0 }
  0x30   : > { %s252_s18 = sshll.u32 %s714_s16, 4  ;;  %s254_s27 = sshll.u32 %s244_s23, 4  ;;  %s253_s18 = int_to_ptr.hbm [resolvable:$true] %s252_s18  ;;  %s255_s27 = int_to_ptr.vmem [resolvable:$true] %s254_s27 }
  0x31   : > { %s241_s10 = scalar_lea.sflag [#allocation6], %s1118_s11  ;;  %s915_s17 = sshra.s32 %s253_s18, 4  ;;  %s916_s17 = int_to_ptr.hbm [resolvable:$true] %s915_s17 }
  0x32   : > { %s917_s19 = scalar_lea.hbm %s916_s17, 64  ;;  %s922_s29 = scalar_lea.hbm %s1447_s1, 256 }
  0x33   : > { %p918_p4 = scmp.ne.s32.totalorder %s916_s17, %s917_s19  ;;  %p923_p0 = scmp.lt.s32.totalorder %s916_s17, %s1447_s1 }
  0x34   : > { %p924_p8 = scmp.lt.s32.totalorder %s922_s29, %s917_s19 }
  0x35   : > { %p920_p5 = pnand %p918_p4, %p889_p2 }
  0x36   : > { %p925_p10 = por %p924_p8, %p923_p0 }
  0x37   : > { %p921_p7 = pneg %p920_p5 }
  0x39   : > { %p926_p1 = pnand %p925_p10, %p921_p7 }
  0x3b   : > { %929 = shalt.err (!%p926_p1)
}
  0x3c   : > { %816 = dma.hbm_to_vmem [thread:$0]  (!%p1131_p13), %s253_s18, 1024, %s255_s27, %s241_s10, %s1017_s13, %s1018_s12, %s1019_s30  }
  0x3d   : > { %266 = sbr.rel (%p1160_p3) target bundleno = 503 (0x1f7), region = 44  ;;  %s1183_s0 = sand.u32 (!%p1160_p3), 1, %s1007_s22  }
  0x3e   : > { %s1186_s23 = sshll.u32 (!%p1160_p3), %s1183_s0, 6  ;;  %s269_s11 = scalar_lea.sflag (!%p1160_p3), [#allocation3], %s1183_s0 }
  0x3f   : > { %s1190_s16 = scalar_lea.vmem (!%p1160_p3), [#allocation2], %s1186_s23 }
  0x42   : > { %990 = dma.done.wait (%p1102_p6), %s269_s11, 1024  }
  0x43   : > { %992 = vsyncadd (%p1102_p6), %s269_s11, 4294966272  ;;  %s279_s27 = scalar_lea.sflag [#allocation6], %s1183_s0  ;;  %s282_s30 = scalar_lea.vmem [#allocation5], %s1186_s23 }
  0x44   : > { %994 = dma.done.wait (%p1102_p6), %s279_s27, 1024  }
  0x45   : > { %996 = vsyncadd (%p1102_p6), %s279_s27, 4294966272  ;;  %v333_v0 = vld [vmem:[%s282_s30 + $0x28] sm:$0xff]  ;;  %v332_v1 = vld [vmem:[%s282_s30 + $0x20] sm:$0xff]  ;;  %v1020_v8 = vmov 128.0   ;;  %vm541_vm14 = vcmask 130048   ;;  %s1395_s14 = scalar_lea.vmem [#allocation7], %s1186_s23 }
  0x46   : > { %v329_v2 = vld [vmem:[%s282_s30 + $0x8] sm:$0xff]  ;;  %346 = vadd.xlane.f32.xlu0 %v333_v0  ;;  %344 = vadd.xlane.f32.xlu1 %v332_v1  ;;  %v335_v3 = vld [vmem:[%s282_s30 + $0x38] sm:$0xff]  ;;  %v334_v4 = vld [vmem:[%s282_s30 + $0x30] sm:$0xff]  ;;  %867 = vrcp.f32 %v1020_v8  ;;  %s803_s7 = sshll.u32 %s1080_s25, 6  ;;  %s657_s8 = scalar_lea.sflag [#allocation4], %s1183_s0 }
  0x47   : > { %338 = vadd.xlane.f32.xlu2 %v329_v2  ;;  %v331_v5 = vld [vmem:[%s282_s30 + $0x18] sm:$0xff]  ;;  %v328_v6 = vld [vmem:[%s282_s30] sm:$0xff]  ;;  %v330_v7 = vld [vmem:[%s282_s30 + $0x10] sm:$0xff]  ;;  %s669_s27 = scalar_lea.hbm %s1452_s6, %s803_s7  ;;  %s670_s30 = sshll.u32 %s1395_s14, 4  ;;  %s671_s30 = int_to_ptr.vmem [resolvable:$true] %s670_s30 }
  0x48   : > { %s672_s25 = sshll.u32 %s669_s27, 4  ;;  %s673_s25 = int_to_ptr.hbm [resolvable:$true] %s672_s25 }
  0x49   : > { %s959_s10 = sshra.s32 %s673_s25, 4  ;;  %s960_s10 = int_to_ptr.hbm [resolvable:$true] %s959_s10 }
  0x4a   : > { %s961_s12 = scalar_lea.hbm %s960_s10, 64  ;;  %p966_p3 = scmp.lt.s32.totalorder %s960_s10, %s1452_s6 }
  0x4b   : > { %p962_p6 = scmp.ne.s32.totalorder %s960_s10, %s961_s12 }
  0x4c   : > { %v868_v9 = vpop.eup %867 }
  0x4d   : > { %v353_v10 = vmul.f32 128.0, %v868_v9  ;;  %vm357_vm0 = vweird.f32 %v868_v9  ;;  %p963_p13 = pnand %p962_p6, %p1109_p11 }
  0x4e   : > { %350 = vadd.xlane.f32.xlu0 %v335_v3  ;;  %348 = vadd.xlane.f32.xlu1 %v334_v4 }
  0x4f   : > { %342 = vadd.xlane.f32.xlu2 %v331_v5  ;;  %v354_v11 = vsub.f32 1.0, %v353_v10  ;;  %p964_p2 = pneg %p963_p13 }
  0x51   : > { %v355_v12 = vmul.f32 %v868_v9, %v354_v11 }
  0x53   : > { %v356_v13 = vadd.f32 %v868_v9, %v355_v12 }
  0x55   : > { %v1202_v14 = vsel %vm357_vm0, %v868_v9, %v356_v13 }
  0x56   : > { %336 = vadd.xlane.f32.xlu0 %v328_v6  ;;  %340 = vadd.xlane.f32.xlu1 %v330_v7 }
  0xb9   : > { %v347_v15 = vpop.xlane.xlu0 %346  ;;  %v345_v16 = vpop.xlane.xlu1 %344 }
  0xba   : > { %v364_v17 = vmul.f32 %v1202_v14, %v347_v15  ;;  %v363_v18 = vmul.f32 %v1202_v14, %v345_v16  ;;  %v339_v19 = vpop.xlane.xlu2 %338 }
  0xbb   : > { %v360_v33 = vmul.f32 %v1202_v14, %v339_v19 }
  0xbc   : > { %v1206_v20 = vsub.f32 %v333_v0, %v364_v17  ;;  %v1208_v21 = vsub.f32 %v332_v1, %v363_v18 }
  0xbd   : > { %v1230_v39 = vsub.f32 %v329_v2, %v360_v33 }
  0xbe   : > { %v379_v22 = vmul.f32 %v1208_v21, %v1208_v21  ;;  %v380_v23 = vmul.f32 %v1206_v20, %v1206_v20 }
  0xbf   : > { %v376_v43 = vmul.f32 %v1230_v39, %v1230_v39 }
  0xc0   : > { %391 = vadd.xlane.f32.xlu1 %v379_v22  ;;  %393 = vadd.xlane.f32.xlu2 %v380_v23 }
  0xc1   : > { %v351_v24 = vpop.xlane.xlu0 %350  ;;  %v349_v25 = vpop.xlane.xlu1 %348 }
  0xc2   : > { %v366_v26 = vmul.f32 %v1202_v14, %v351_v24  ;;  %v365_v27 = vmul.f32 %v1202_v14, %v349_v25  ;;  %v343_v28 = vpop.xlane.xlu2 %342 }
  0xc3   : > { %v362_v29 = vmul.f32 %v1202_v14, %v343_v28 }
  0xc4   : > { %v1217_v30 = vsub.f32 %v335_v3, %v366_v26  ;;  %v1219_v31 = vsub.f32 %v334_v4, %v365_v27 }
  0xc5   : > { %v1221_v32 = vsub.f32 %v331_v5, %v362_v29 }
  0xc6   : > { %v381_v34 = vmul.f32 %v1219_v31, %v1219_v31  ;;  %v382_v35 = vmul.f32 %v1217_v30, %v1217_v30 }
  0xc7   : > { %v378_v36 = vmul.f32 %v1221_v32, %v1221_v32 }
  0xc8   : > { %395 = vadd.xlane.f32.xlu2 %v381_v34  ;;  %397 = vadd.xlane.f32.xlu0 %v382_v35 }
  0xc9   : > { %389 = vadd.xlane.f32.xlu1 %v378_v36  ;;  %v337_v37 = vpop.xlane.xlu0 %336  ;;  %v341_v38 = vpop.xlane.xlu1 %340 }
  0xca   : > { %v359_v40 = vmul.f32 %v1202_v14, %v337_v37  ;;  %v361_v42 = vmul.f32 %v1202_v14, %v341_v38 }
  0xcc   : > { %v1233_v41 = vsub.f32 %v328_v6, %v359_v40  ;;  %v1240_v45 = vsub.f32 %v330_v7, %v361_v42 }
  0xce   : > { %v375_v44 = vmul.f32 %v1233_v41, %v1233_v41  ;;  %v377_v46 = vmul.f32 %v1240_v45, %v1240_v45 }
  0xd0   : > { %385 = vadd.xlane.f32.xlu0 %v376_v43  ;;  %383 = vadd.xlane.f32.xlu2 %v375_v44  ;;  %v1289_v43 = vld [vmem:[%s1450_s4] ss:$0 sm:$0xff] }
  0xd8   : > { %387 = vadd.xlane.f32.xlu0 %v377_v46 }
 0x133   : > { %v392_v47 = vpop.xlane.xlu1 %391  ;;  %v394_v48 = vpop.xlane.xlu2 %393 }
 0x134   : > { %v403_v49 = vmul.f32 %v392_v47, %v1202_v14  ;;  %v404_v50 = vmul.f32 %v394_v48, %v1202_v14 }
 0x136   : > { %v411_v51 = vadd.f32 1e-05, %v403_v49  ;;  %v412_v52 = vadd.f32 1e-05, %v404_v50 }
 0x138   : > { %869 = vrsqrt.f32 %v411_v51  ;;  %vm461_vm1 = vweird.f32 %v411_v51  ;;  %vm471_vm5 = vweird.f32 %v412_v52 }
 0x139   : > { %871 = vrsqrt.f32 %v412_v52 }
 0x13b   : > { %v396_v53 = vpop.xlane.xlu2 %395  ;;  %v398_v54 = vpop.xlane.xlu0 %397 }
 0x13c   : > { %v390_v55 = vpop.xlane.xlu1 %389  ;;  %v405_v56 = vmul.f32 %v396_v53, %v1202_v14  ;;  %v406_v57 = vmul.f32 %v398_v54, %v1202_v14 }
 0x13d   : > { %v402_v58 = vmul.f32 %v390_v55, %v1202_v14 }
 0x13e   : > { %v870_v59 = vpop.eup %869  ;;  %v1249_v60 = vadd.f32 1e-05, %v405_v56  ;;  %v1251_v61 = vadd.f32 1e-05, %v406_v57  ;;  %v529_v57 = vld [vmem:[%s1449_s3] sm:$0xff] }
 0x13f   : > { %v872_v62 = vpop.eup %871  ;;  %v456_v63 = vmul.f32 %v870_v59, %v411_v51  ;;  %v410_v0 = vadd.f32 1e-05, %v402_v58  ;;  %vm462_vm2 = vweird.f32 %v870_v59  ;;  %v530_v58 = vld [vmem:[%s1449_s3 + $0x8] sm:$0xff] }
 0x140   : > { %v466_v1 = vmul.f32 %v872_v62, %v412_v52  ;;  %873 = vrsqrt.f32 %v1249_v60  ;;  %vm472_vm3 = vweird.f32 %v872_v62  ;;  %vm1271_vm4 = vmor %vm461_vm1, %vm462_vm2  ;;  %vm481_vm9 = vweird.f32 %v1249_v60 }
 0x141   : > { %v457_v2 = vmul.f32 %v870_v59, %v456_v63  ;;  %875 = vrsqrt.f32 %v410_v0  ;;  %vm473_vm6 = vmor %vm471_vm5, %vm472_vm3  ;;  %vm451_vm7 = vweird.f32 %v410_v0  ;;  %vm491_vm11 = vweird.f32 %v1251_v61 }
 0x142   : > { %v467_v3 = vmul.f32 %v872_v62, %v466_v1  ;;  %877 = vrsqrt.f32 %v1251_v61 }
 0x143   : > { %v458_v4 = vmul.f32 0.5, %v457_v2  ;;  %v384_v5 = vpop.xlane.xlu2 %383  ;;  %v386_v6 = vpop.xlane.xlu0 %385 }
 0x144   : > { %v468_v7 = vmul.f32 0.5, %v467_v3  ;;  %v399_v8 = vmul.f32 %v384_v5, %v1202_v14  ;;  %v400_v9 = vmul.f32 %v386_v6, %v1202_v14 }
 0x145   : > { %v459_v10 = vsub.f32 1.5, %v458_v4  ;;  %v1021_v4 = vmov 0  }
 0x146   : > { %v1257_v11 = vpop.eup %873  ;;  %v469_v12 = vsub.f32 1.5, %v468_v7  ;;  %v1259_v13 = vadd.f32 1e-05, %v399_v8  ;;  %v1261_v15 = vadd.f32 1e-05, %v400_v9  ;;  %862 = vset.pattern.permute.xlu1 %v1021_v4  ;;  %863 = vset.pattern.permute.xlu2 %v1021_v4  ;;  %v527_v9 = vld [vmem:[%s1448_s2] sm:$0xff] }
 0x147   : > { %v1263_v16 = vpop.eup %875  ;;  %v460_v17 = vmul.f32 %v870_v59, %v459_v10  ;;  %v476_v18 = vmul.f32 %v1257_v11, %v1249_v60  ;;  %vm482_vm10 = vweird.f32 %v1257_v11  ;;  %533 = vperm.xlu1 %862, %v529_v57   ;;  %538 = vperm.xlu2 %863, %v530_v58  }
 0x148   : > { %v1267_v19 = vpop.eup %877  ;;  %v446_v22 = vmul.f32 %v1263_v16, %v410_v0  ;;  %879 = vrsqrt.f32 %v1259_v13  ;;  %v470_v27 = vmul.f32 %v872_v62, %v469_v12  ;;  %vm452_vm8 = vweird.f32 %v1263_v16  ;;  %vm483_vm15 = vmor %vm481_vm9, %vm482_vm10  ;;  %864 = vset.pattern.permute.xlu0 %v1021_v4 }
 0x149   : > { %v477_v24 = vmul.f32 %v1257_v11, %v476_v18  ;;  %v486_v25 = vmul.f32 %v1267_v19, %v1251_v61  ;;  %881 = vrsqrt.f32 %v1261_v15  ;;  %v464_v28 = vsel %vm1271_vm4, %v870_v59, %v460_v17  ;;  %vm1312_vm12 = vmor %vm451_vm7, %vm452_vm8 }
 0x14a   : > { %v447_v26 = vmul.f32 %v1263_v16, %v446_v22  ;;  %v474_v37 = vsel %vm473_vm6, %v872_v62, %v470_v27  ;;  %v499_v44 = vmul.f32 %v464_v28, %v1208_v21  ;;  %v1307_v21 = vld [vmem:[%s1451_s5] ss:$0 sm:$0xff]  ;;  %vm492_vm13 = vweird.f32 %v1267_v19 }
 0x14b   : > { %v478_v29 = vmul.f32 0.5, %v477_v24  ;;  %v487_v33 = vmul.f32 %v1267_v19, %v486_v25  ;;  %v388_v34 = vpop.xlane.xlu0 %387  ;;  %v500_v42 = vmul.f32 %v474_v37, %v1206_v20  ;;  %vm1335_vm0 = vmor %vm491_vm11, %vm492_vm13  ;;  %vm421_vm1 = vweird.f32 %v1259_v13 }
 0x14c   : > { %v448_v35 = vmul.f32 0.5, %v447_v26  ;;  %v401_v36 = vmul.f32 %v388_v34, %v1202_v14  ;;  %v511_v55 = vmul.f32 %v1289_v43, %v499_v44  ;;  %vm431_vm5 = vweird.f32 %v1261_v15  ;;  %v528_v34 = vld [vmem:[%s1448_s2 + $0x8] sm:$0xff] }
 0x14d   : > { %v479_v38 = vsub.f32 1.5, %v478_v29  ;;  %v488_v40 = vmul.f32 0.5, %v487_v33  ;;  %v512_v54 = vmul.f32 %v1289_v43, %v500_v42  ;;  %v324_v42 = vld [vmem:[%s1190_s16 + $0x20] sm:$0xff] }
 0x14e   : > { %v1292_v46 = vpop.eup %879  ;;  %v449_v47 = vsub.f32 1.5, %v448_v35  ;;  %v1296_v14 = vadd.f32 1e-05, %v401_v36 }
 0x14f   : > { %v1298_v48 = vpop.eup %881  ;;  %v480_v20 = vmul.f32 %v1257_v11, %v479_v38  ;;  %v489_v49 = vsub.f32 1.5, %v488_v40  ;;  %v416_v50 = vmul.f32 %v1292_v46, %v1259_v13  ;;  %v524_v1 = vadd.f32 %v1307_v21, %v512_v54 }
 0x150   : > { %v426_v52 = vmul.f32 %v1298_v48, %v1261_v15  ;;  %883 = vrsqrt.f32 %v1296_v14  ;;  %v450_v56 = vmul.f32 %v1263_v16, %v449_v47  ;;  %vm422_vm2 = vweird.f32 %v1292_v46 }
 0x151   : > { %v417_v53 = vmul.f32 %v1292_v46, %v416_v50  ;;  %v490_v60 = vmul.f32 %v1267_v19, %v489_v49  ;;  %v484_v62 = vsel %vm483_vm15, %v1257_v11, %v480_v20  ;;  %608 = vmatpush.msra.mxu2 %v524_v1  ;;  %vm432_vm3 = vweird.f32 %v1298_v48  ;;  %vm423_vm4 = vmor %vm421_vm1, %vm422_vm2  ;;  %v326_v20 = vld [vmem:[%s1190_s16 + $0x30] sm:$0xff] }
 0x152   : > { %v427_v59 = vmul.f32 %v1298_v48, %v426_v52  ;;  %v454_v2 = vsel %vm1312_vm12, %v1263_v16, %v450_v56  ;;  %v501_v3 = vmul.f32 %v484_v62, %v1219_v31  ;;  %v523_v31 = vadd.f32 %v1307_v21, %v511_v55  ;;  %vm433_vm6 = vmor %vm431_vm5, %vm432_vm3  ;;  %v325_v52 = vld [vmem:[%s1190_s16 + $0x28] sm:$0xff]  ;;  %v322_v56 = vld [vmem:[%s1190_s16 + $0x10] sm:$0xff] }
 0x153   : > { %v418_v0 = vmul.f32 0.5, %v417_v53  ;;  %v498_v61 = vmul.f32 %v454_v2, %v1221_v32  ;;  %v494_v6 = vsel %vm1335_vm0, %v1267_v19, %v490_v60  ;;  %vm441_vm8 = vweird.f32 %v1296_v14  ;;  %v321_v62 = vld [vmem:[%s1190_s16 + $0x8] sm:$0xff] }
 0x154   : > { %v428_v5 = vmul.f32 0.5, %v427_v59  ;;  %v502_v8 = vmul.f32 %v494_v6, %v1217_v30  ;;  %609 = vmatpush.msra.mxu2 %v523_v31  ;;  %v513_v30 = vmul.f32 %v1289_v43, %v501_v3 }
 0x155   : > { %v419_v7 = vsub.f32 1.5, %v418_v0  ;;  %v510_v11 = vmul.f32 %v1289_v43, %v498_v61  ;;  %789 = vmatmul.msk.f32.vlgmr.msra.gmra.mxu2 %vm541_vm14, %v527_v9  ;;  %v327_v0 = vld [vmem:[%s1190_s16 + $0x38] sm:$0xff] }
 0x156   : > { %v884_v32 = vpop.eup %883  ;;  %v429_v10 = vsub.f32 1.5, %v428_v5  ;;  %v514_v17 = vmul.f32 %v1289_v43, %v502_v8  ;;  %v525_v15 = vadd.f32 %v1307_v21, %v513_v30  ;;  %v323_v61 = vld [vmem:[%s1190_s16 + $0x18] sm:$0xff] }
 0x157   : > { %v420_v12 = vmul.f32 %v1292_v46, %v419_v7  ;;  %v436_v16 = vmul.f32 %v884_v32, %v1296_v14  ;;  %v522_v18 = vadd.f32 %v1307_v21, %v510_v11  ;;  %vm442_vm7 = vweird.f32 %v884_v32  ;;  %v320_v14 = vld [vmem:[%s1190_s16] sm:$0xff]  ;;  %s965_s16 = scalar_lea.hbm %s1452_s6, 128 }
 0x158   : > { %v430_v19 = vmul.f32 %v1298_v48, %v429_v10  ;;  %v526_v23 = vadd.f32 %v1307_v21, %v514_v17  ;;  %vm443_vm9 = vmor %vm441_vm8, %vm442_vm7  ;;  %p967_p4 = scmp.lt.s32.totalorder %s965_s16, %s961_s12 }
 0x159   : > { %v437_v22 = vmul.f32 %v884_v32, %v436_v16  ;;  %v424_v24 = vsel %vm423_vm4, %v1292_v46, %v420_v12  ;;  %585 = vmatpush.msra.mxu1 %v522_v18 }
 0x15a   : > { %v434_v25 = vsel %vm433_vm6, %v1298_v48, %v430_v19  ;;  %v495_v13 = vmul.f32 %v424_v24, %v1233_v41  ;;  %631 = vmatpush.msra.mxu3 %v526_v23  ;;  %p968_p5 = por %p967_p4, %p966_p3 }
 0x15b   : > { %v438_v26 = vmul.f32 0.5, %v437_v22  ;;  %v496_v27 = vmul.f32 %v434_v25, %v1230_v39 }
 0x15c   : > { %632 = vmatpush.msra.mxu3 %v525_v15  ;;  %v507_v33 = vmul.f32 %v1289_v43, %v495_v13  ;;  %p969_p7 = pnand %p968_p5, %p964_p2 }
 0x15d   : > { %v439_v28 = vsub.f32 1.5, %v438_v26  ;;  %v508_v29 = vmul.f32 %v1289_v43, %v496_v27  ;;  %791 = vmatmul.msk.f32.vlgmr.msra.gmra.mxu3 %vm541_vm14, %v527_v9  ;;  %790 = vmatmul.msk.f32.gmra.mxu2 %vm541_vm14, %v528_v34 }
 0x15e   : > { %v519_v39 = vadd.f32 %v1307_v21, %v507_v33 }
 0x15f   : > { %v440_v41 = vmul.f32 %v884_v32, %v439_v28  ;;  %v520_v35 = vadd.f32 %v1307_v21, %v508_v29 }
 0x161   : > { %562 = vmatpush.msra.mxu0 %v520_v35  ;;  %v444_v36 = vsel %vm443_vm9, %v884_v32, %v440_v41 }
 0x162   : > { %v497_v37 = vmul.f32 %v444_v36, %v1240_v45 }
 0x163   : > { %563 = vmatpush.msra.mxu0 %v519_v39 }
 0x164   : > { %v509_v38 = vmul.f32 %v1289_v43, %v497_v37  ;;  %785 = vmatmul.msk.f32.vlgmr.msra.gmra.mxu0 %vm541_vm14, %v527_v9 }
 0x165   : > { %792 = vmatmul.msk.f32.gmra.mxu3 %vm541_vm14, %v528_v34 }
 0x166   : > { %v521_v40 = vadd.f32 %v1307_v21, %v509_v38 }
 0x168   : > { %586 = vmatpush.msra.mxu1 %v521_v40 }
 0x169   : > { %787 = vmatmul.msk.f32.vlgmr.msra.gmra.mxu1 %vm541_vm14, %v527_v9 }
 0x16c   : > { %786 = vmatmul.msk.f32.gmra.mxu0 %vm541_vm14, %v528_v34 }
 0x171   : > { %788 = vmatmul.msk.f32.gmra.mxu1 %vm541_vm14, %v528_v34 }
 0x1a1   : > { %v539_v47 = vpop.permute.xlu2 %538 }
 0x1b9   : > { %v534_v45 = vpop.permute.xlu1 %533 }
 0x1d8   : > { %v611_v44 = vpop.f32.mrf.mxu2 }
 0x1d9   : > { %v612_v43 = vadd.f32 %v611_v44, %v534_v45 }
 0x1db   : > { %v644_v46 = vmul.f32 %v612_v43, %v324_v42 }
 0x1dd   : > { %652 = vst [vmem:[%s1395_s14 + $0x20] sm:$0xff] %v644_v46 }
 0x1e0   : > { %v634_v49 = vpop.f32.mrf.mxu3  ;;  %v614_v51 = vpop.f32.mrf.mxu2 }
 0x1e1   : > { %v565_v48 = vpop.f32.mrf.mxu0  ;;  %v635_v21 = vadd.f32 %v634_v49, %v534_v45  ;;  %v615_v55 = vadd.f32 %v614_v51, %v539_v47 }
 0x1e2   : > { %v566_v50 = vadd.f32 %v565_v48, %v534_v45 }
 0x1e3   : > { %v646_v54 = vmul.f32 %v635_v21, %v326_v20  ;;  %v645_v58 = vmul.f32 %v615_v55, %v325_v52 }
 0x1e4   : > { %v640_v53 = vmul.f32 %v566_v50, %v320_v14 }
 0x1e5   : > { %654 = vst [vmem:[%s1395_s14 + $0x30] sm:$0xff] %v646_v54 }
 0x1e6   : > { %648 = vst [vmem:[%s1395_s14] sm:$0xff] %v640_v53  ;;  %v588_v57 = vpop.f32.mrf.mxu1 }
 0x1e7   : > { %v589_v59 = vadd.f32 %v588_v57, %v534_v45  ;;  %653 = vst [vmem:[%s1395_s14 + $0x28] sm:$0xff] %v645_v58 }
 0x1e8   : > { %v637_v1 = vpop.f32.mrf.mxu3 }
 0x1e9   : > { %v642_v60 = vmul.f32 %v589_v59, %v322_v56  ;;  %v568_v63 = vpop.f32.mrf.mxu0  ;;  %v638_v3 = vadd.f32 %v637_v1, %v539_v47 }
 0x1ea   : > { %v569_v2 = vadd.f32 %v568_v63, %v539_v47 }
 0x1eb   : > { %650 = vst [vmem:[%s1395_s14 + $0x10] sm:$0xff] %v642_v60  ;;  %v647_v5 = vmul.f32 %v638_v3, %v327_v0 }
 0x1ec   : > { %v641_v4 = vmul.f32 %v569_v2, %v321_v62 }
 0x1ed   : > { %655 = vst [vmem:[%s1395_s14 + $0x38] sm:$0xff] %v647_v5 }
 0x1ee   : > { %649 = vst [vmem:[%s1395_s14 + $0x8] sm:$0xff] %v641_v4  ;;  %v591_v6 = vpop.f32.mrf.mxu1 }
 0x1ef   : > { %v592_v7 = vadd.f32 %v591_v6, %v539_v47 }
 0x1f1   : > { %v643_v31 = vmul.f32 %v592_v7, %v323_v61 }
 0x1f3   : > { %651 = vst [vmem:[%s1395_s14 + $0x18] sm:$0xff] %v643_v31 }
 0x1f4   : > { %972 = shalt.err (!%p969_p7)
}
 0x1f5   : > { %s1022_s0 = smov 128   ;;  %s1023_s17 = smov 8  }
 0x1f6   : > { %808 = dma.vmem_to_hbm [thread:$0]  (%p1109_p11), %s671_s30, 1024, %s673_s25, %s657_s8, %s1022_s0, %s1022_s0, %s1023_s17  }
 0x1f7 PF: > { %s687_s26 = sand.u32 1, %s1003_s21   ;;  %p818_p0 = pnand %p773_p9, %p1113_p12 }
 0x1f8   : > { %s688_s28 = scalar_lea.sflag [#allocation4], %s687_s26 }
 0x1f9   : > { %p819_p8 = pneg %p818_p0 }
 0x1fb   : > { %998 = dma.done.wait (%p819_p8), %s688_s28, 1024  }
 0x1fc   : > { %1000 = vsyncadd (%p819_p8), %s688_s28, 4294966272  ;;  %s1480_s24 = sld [smem:[#allocation12_spill]]  ;;  %s1483_s21 = smov %s1007_s22 }
 0x1fd   : > { %s1481_s29 = sld [smem:[#allocation11_spill]] }
 0x1fe   : > { %s1482_s23 = sld [smem:[#allocation13_spill]] }
 0x202   : > { %p22_p10 = scmp.ge.s32.totalorder %s1480_s24, 4  }
 0x203   : > { %s1484_s22 = smov %s1481_s29 }
 0x204   :  { %24 = sbr.rel (!%p22_p10) target bundleno = 9 (0x9), region = 102 }
 0x209   :  { %694 = vsyncpa [#allocation3], 1 }
 0x20a   :  { %696 = vsyncpa [#allocation3 + $0x1], 1 }
 0x20b   :  { %697 = vsyncpa [#allocation6], 1 }
 0x20c   :  { %699 = vsyncpa [#allocation6 + $0x1], 1 }
 0x20d   :  { %700 = vsyncpa [#allocation4], 1 }
 0x20e   :  { %702 = vsyncpa [#allocation4 + $0x1], 1 }

</bundles_post_ra>
